<compile_context>
chip_gen: v6e
topology: v6e:2x2x1
jax: 0.10.0
libtpu: 0.0.40
codegen_flags: <defaults>
</compile_context>

<pallas_src>
import functools

import jax
import jax.numpy as jnp
from jax.experimental import pallas as pl
from jax.experimental.pallas import tpu as pltpu

LANE = 128
_VMEM_LIMIT = 32 * 1024 * 1024   # safe scoped limit on v5e/v6e/v7x


# ------------------------------ small helpers ------------------------------ #

def _round_up(x, m):
    return (x + m - 1) // m * m


def _pad2(a, rows, cols):
    return jnp.pad(a, ((0, rows - a.shape[0]), (0, cols - a.shape[1])))


def _pad_cols(a, cols):
    return jnp.pad(a, ((0, 0), (0, cols - a.shape[1])))


def _pad_vec(v, n):
    return jnp.pad(v, (0, n - v.shape[0]))


def _pick_tm(m, target=512):
    """Largest row tile dividing M, preferring >=2 grid steps (pipelining)."""
    cands = (target, 256, 128, 64, 32, 16, 8)
    for cand in cands:
        if cand <= m and m % cand == 0 and m // cand >= 2:
            return cand
    for cand in cands:
        if cand <= m and m % cand == 0:
            return cand
    return m


def _pick_ht(h, w, cout, acc_budget=512 * 1024):
    """Largest H-tile whose f32 accumulator (ht*w, cout) stays <= budget."""
    cands = [ht for ht in range(1, h + 1)
             if h % ht == 0 and ((ht * w) % 8 == 0 or ht == h)]
    fitting = [ht for ht in cands if ht * w * cout * 4 <= acc_budget]
    return max(fitting) if fitting else min(cands)


def fold_bn(bn, eps=1e-5):
    gamma, beta, mean, var = bn
    scale = gamma / jnp.sqrt(var + eps)
    bias = beta - mean * scale
    return scale, bias


# One resident (single-buffered, whole-array-in-VMEM) copy for operands whose
# block never changes across the grid (weights, folded BN scale/bias).
_RESIDENT = pl.BlockSpec(memory_space=pltpu.MemorySpace.VMEM)


# ------------------------------ Pallas kernels ------------------------------ #

def _matmul_affine_kernel(x_ref, w_ref, s_ref, b_ref, o_ref, *, relu):
    acc = jnp.dot(x_ref[...], w_ref[...], preferred_element_type=jnp.float32)
    out = acc * s_ref[...] + b_ref[...]
    if relu:
        out = jnp.maximum(out, 0.0)
    o_ref[...] = out.astype(o_ref.dtype)


def _matmul_affine_res_kernel(x_ref, w_ref, s_ref, b_ref, r_ref, o_ref, *, relu):
    acc = jnp.dot(x_ref[...], w_ref[...], preferred_element_type=jnp.float32)
    out = acc * s_ref[...] + b_ref[...] + r_ref[...].astype(jnp.float32)
    if relu:
        out = jnp.maximum(out, 0.0)
    o_ref[...] = out.astype(o_ref.dtype)


def _conv1_shortcut_kernel(x_ref, w_ref, s1_ref, b1_ref, s2_ref, b2_ref,
                           o1_ref, o2_ref, *, n1):
    # One matmul with the conv1 and 1x1x1-shortcut weights concatenated on N.
    acc = jnp.dot(x_ref[...], w_ref[...], preferred_element_type=jnp.float32)
    h = acc[:, :n1] * s1_ref[...] + b1_ref[...]
    o1_ref[...] = jnp.maximum(h, 0.0).astype(o1_ref.dtype)      # conv1+bn1+relu
    s = acc[:, n1:] * s2_ref[...] + b2_ref[...]
    o2_ref[...] = s.astype(o2_ref.dtype)                        # shortcut+bn


def _conv2_kernel(prev_ref, cur_ref, nxt_ref, w_ref, s_ref, b_ref, o_ref,
                  pad_ref, *, H, W, HT, C):
    """3x3x3 conv + BN + ReLU.

    prev/cur/nxt: (1, 1, H*W, C) depth-halo slices (clamped at the borders).
    pad_ref: (H+2, W+2, 3*C) scratch -- H/W zero-padded slab with the three
    depth taps fused along channels, so each (kh, kw) tap is ONE K=3*C matmul.
    Output block: (1, 1, HT*W, Cout) compact rows (no junk columns).
    """
    di = pl.program_id(1)
    hi = pl.program_id(2)
    n_d = pl.num_programs(1)

    @pl.when(hi == 0)
    def _build_slab():
        # Zero the whole slab (borders included) then write the interior.
        pad_ref[...] = jnp.zeros_like(pad_ref)
        prev = prev_ref[0, 0].reshape(H, W, C)
        prev = jnp.where(di > 0, prev, jnp.zeros_like(prev))         # depth pad
        cur = cur_ref[0, 0].reshape(H, W, C)
        nxt = nxt_ref[0, 0].reshape(H, W, C)
        nxt = jnp.where(di < n_d - 1, nxt, jnp.zeros_like(nxt))      # depth pad
        pad_ref[1:H + 1, 1:W + 1, 0:C] = prev
        pad_ref[1:H + 1, 1:W + 1, C:2 * C] = cur
        pad_ref[1:H + 1, 1:W + 1, 2 * C:3 * C] = nxt

    Cout = o_ref.shape[-1]
    h0 = hi * HT
    acc = jnp.zeros((HT * W, Cout), jnp.float32)
    for kh in range(3):
        for kw in range(3):
            win = pad_ref[pl.ds(h0 + kh, HT), kw:kw + W, :]
            acc = acc + jnp.dot(win.reshape(HT * W, 3 * C),
                                w_ref[kh * 3 + kw],
                                preferred_element_type=jnp.float32)
    out = jnp.maximum(acc * s_ref[...] + b_ref[...], 0.0)
    o_ref[...] = out.astype(o_ref.dtype).reshape(o_ref.shape)


# ------------------------------ kernel wrappers ----------------------------- #

def fused_matmul_bn(x, w, scale, bias, residual=None, relu=True,
                    out_dtype=jnp.bfloat16, tm_target=512):
    """out = [relu]((x @ w) * scale + bias [+ residual]); bf16 in, f32 accum."""
    M, K = x.shape
    N = w.shape[1]
    tm = _pick_tm(M, tm_target)

    in_specs = [pl.BlockSpec((tm, K), lambda i: (i, 0)),
                _RESIDENT, _RESIDENT, _RESIDENT]
    args = [x.astype(jnp.bfloat16), w.astype(jnp.bfloat16),
            scale.reshape(1, N).astype(jnp.float32),
            bias.reshape(1, N).astype(jnp.float32)]
    flops = 2 * M * K * N
    bytes_acc = (M * K + K * N) * 2 + 2 * N * 4 + M * N * jnp.dtype(out_dtype).itemsize

    if residual is None:
        kernel = functools.partial(_matmul_affine_kernel, relu=relu)
    else:
        kernel = functools.partial(_matmul_affine_res_kernel, relu=relu)
        in_specs.append(pl.BlockSpec((tm, N), lambda i: (i, 0)))
        args.append(residual.astype(jnp.bfloat16))
        bytes_acc += M * N * 2

    return pl.pallas_call(
        kernel,
        out_shape=jax.ShapeDtypeStruct((M, N), out_dtype),
        grid=(M // tm,),
        in_specs=in_specs,
        out_specs=pl.BlockSpec((tm, N), lambda i: (i, 0)),
        compiler_params=pltpu.CompilerParams(
            dimension_semantics=("parallel",),
            vmem_limit_bytes=_VMEM_LIMIT),
        cost_estimate=pl.CostEstimate(flops=flops, transcendentals=0,
                                      bytes_accessed=bytes_acc),
    )(*args)


def fused_conv1_shortcut(x, w_cat, s1, b1, s2, b2, n1, n2, tm_target=512):
    """Fused conv1+bn1+relu and 1x1x1-shortcut+bn in one pass over x."""
    M, K = x.shape
    tm = _pick_tm(M, tm_target)
    flops = 2 * M * K * (n1 + n2)
    bytes_acc = (M * K + K * (n1 + n2) + M * (n1 + n2)) * 2 + 2 * (n1 + n2) * 4
    return pl.pallas_call(
        functools.partial(_conv1_shortcut_kernel, n1=n1),
        out_shape=(jax.ShapeDtypeStruct((M, n1), jnp.bfloat16),
                   jax.ShapeDtypeStruct((M, n2), jnp.bfloat16)),
        grid=(M // tm,),
        in_specs=[pl.BlockSpec((tm, K), lambda i: (i, 0)),
                  _RESIDENT, _RESIDENT, _RESIDENT, _RESIDENT, _RESIDENT],
        out_specs=(pl.BlockSpec((tm, n1), lambda i: (i, 0)),
                   pl.BlockSpec((tm, n2), lambda i: (i, 0))),
        compiler_params=pltpu.CompilerParams(
            dimension_semantics=("parallel",),
            vmem_limit_bytes=_VMEM_LIMIT),
        cost_estimate=pl.CostEstimate(flops=flops, transcendentals=0,
                                      bytes_accessed=bytes_acc),
    )(x.astype(jnp.bfloat16), w_cat.astype(jnp.bfloat16),
      s1.reshape(1, n1).astype(jnp.float32), b1.reshape(1, n1).astype(jnp.float32),
      s2.reshape(1, n2).astype(jnp.float32), b2.reshape(1, n2).astype(jnp.float32))


def conv2_3x3x3_bn_relu(h1, w2_packed, scale, bias, n, d, h, w):
    """3x3x3 conv (stride 1, pad 1) + BN + ReLU.

    h1        : (n, d, h*w, C) bf16, channel-padded (no spatial pre-padding).
    w2_packed : (9, 3*C, Cout) -- (kh, kw) taps with the 3 kd taps fused on K.
    """
    C = h1.shape[-1]
    Cout = w2_packed.shape[-1]
    ht = _pick_ht(h, w, Cout)
    n_ht = h // ht

    flops = 2 * n * d * h * w * 27 * C * Cout
    bytes_acc = (3 * h1.size + w2_packed.size + n * d * h * w * Cout) * 2 \
        + 2 * Cout * 4

    h1b = h1.astype(jnp.bfloat16)
    return pl.pallas_call(
        functools.partial(_conv2_kernel, H=h, W=w, HT=ht, C=C),
        out_shape=jax.ShapeDtypeStruct((n, d, h * w, Cout), jnp.bfloat16),
        grid=(n, d, n_ht),
        in_specs=[
            # Depth-halo slices; index maps clamp at the depth borders and the
            # kernel zeroes the out-of-range contributions.
            pl.BlockSpec((1, 1, h * w, C),
                         lambda ni, di, hi: (ni, jnp.maximum(di - 1, 0), 0, 0)),
            pl.BlockSpec((1, 1, h * w, C),
                         lambda ni, di, hi: (ni, di, 0, 0)),
            pl.BlockSpec((1, 1, h * w, C),
                         lambda ni, di, hi: (ni, jnp.minimum(di + 1, d - 1), 0, 0)),
            _RESIDENT,   # packed conv2 weights
            _RESIDENT,   # folded BN scale
            _RESIDENT,   # folded BN bias
        ],
        out_specs=pl.BlockSpec((1, 1, ht * w, Cout),
                               lambda ni, di, hi: (ni, di, hi, 0)),
        scratch_shapes=[pltpu.VMEM((h + 2, w + 2, 3 * C), jnp.bfloat16)],
        compiler_params=pltpu.CompilerParams(
            dimension_semantics=("parallel", "parallel", "arbitrary"),
            vmem_limit_bytes=_VMEM_LIMIT),
        cost_estimate=pl.CostEstimate(flops=flops, transcendentals=0,
                                      bytes_accessed=bytes_acc),
    )(h1b, h1b, h1b, w2_packed.astype(jnp.bfloat16),
      scale.reshape(1, Cout).astype(jnp.float32),
      bias.reshape(1, Cout).astype(jnp.float32))


# ---------------------------------- forward --------------------------------- #

def init_bottleneck_params(key, in_planes, planes, expansion=4):
    """Deterministic synthetic parameters (shapes follow the PyTorch module)."""
    ks = jax.random.split(key, 8)

    def conv_w(k, shape):
        return jax.random.normal(k, shape, jnp.float32) * 0.1

    def bn_params(k, c):
        k1, k2, k3, k4 = jax.random.split(k, 4)
        gamma = 1.0 + 0.1 * jax.random.normal(k1, (c,), jnp.float32)
        beta = 0.1 * jax.random.normal(k2, (c,), jnp.float32)
        mean = 0.1 * jax.random.normal(k3, (c,), jnp.float32)
        var = 1.0 + 0.1 * jax.random.uniform(k4, (c,), jnp.float32)
        return (gamma, beta, mean, var)

    out_planes = expansion * planes
    params = {
        "w1": conv_w(ks[0], (planes, in_planes, 1, 1, 1)),
        "w2": conv_w(ks[1], (planes, planes, 3, 3, 3)),
        "w3": conv_w(ks[2], (out_planes, planes, 1, 1, 1)),
        "bn1": bn_params(ks[3], planes),
        "bn2": bn_params(ks[4], planes),
        "bn3": bn_params(ks[5], out_planes),
    }
    if in_planes != out_planes:
        params["w_sc"] = conv_w(ks[6], (out_planes, in_planes, 1, 1, 1))
        params["bn_sc"] = bn_params(ks[7], out_planes)
    return params


def bottleneck_forward(x_ncdhw, params, in_planes, planes, expansion=4,
                       eps=1e-5, tm_target=512):
    n, c, d, h, w = x_ncdhw.shape
    assert c == in_planes
    out_planes = expansion * planes
    M = n * d * h * w

    cin_p = _round_up(in_planes, LANE)
    mid_p = _round_up(planes, LANE)
    out_p = _round_up(out_planes, LANE)

    # NCDHW -> NDHWC -> (M, Cin), zero-pad channels to lane width, bf16.
    x_cl = jnp.transpose(x_ncdhw, (0, 2, 3, 4, 1)).reshape(M, in_planes)
    x_p = _pad_cols(x_cl, cin_p).astype(jnp.bfloat16)

    # Folded (inference-mode) BN params, zero padded to lane width.
    s1, b1 = fold_bn(params["bn1"], eps)
    s2, b2 = fold_bn(params["bn2"], eps)
    s3, b3 = fold_bn(params["bn3"], eps)
    s1, b1 = _pad_vec(s1, mid_p), _pad_vec(b1, mid_p)
    s2, b2 = _pad_vec(s2, mid_p), _pad_vec(b2, mid_p)
    s3, b3 = _pad_vec(s3, out_p), _pad_vec(b3, out_p)

    # 1x1x1 conv weights -> matmul layout (Cin_p, Cout_p).
    w1 = _pad2(params["w1"].reshape(planes, in_planes).T, cin_p, mid_p)
    w3 = _pad2(params["w3"].reshape(out_planes, planes).T, mid_p, out_p)

    # conv2 weights (Cout, Cin, kD, kH, kW) -> (kH*kW, 3*Cin_p, Cout_p) with
    # the three kd taps fused along K (matches the kernel's fused slab layout).
    w2 = jnp.pad(params["w2"],
                 ((0, mid_p - planes), (0, mid_p - planes),
                  (0, 0), (0, 0), (0, 0)))
    w2 = jnp.transpose(w2, (3, 4, 2, 1, 0)).reshape(9, 3 * mid_p, mid_p)

    has_proj = in_planes != out_planes
    if has_proj:
        wsc = _pad2(params["w_sc"].reshape(out_planes, in_planes).T, cin_p, out_p)
        ssc, bsc = fold_bn(params["bn_sc"], eps)
        ssc, bsc = _pad_vec(ssc, out_p), _pad_vec(bsc, out_p)
        w_cat = jnp.concatenate([w1, wsc], axis=1)       # (cin_p, mid_p + out_p)
        h1, sc = fused_conv1_shortcut(x_p, w_cat, s1, b1, ssc, bsc,
                                      mid_p, out_p, tm_target)
    else:
        h1 = fused_matmul_bn(x_p, w1, s1, b1, relu=True, tm_target=tm_target)
        sc = x_p                                         # identity (cin_p == out_p)

    # conv2: 3x3x3, stride 1, pad 1 -- depth-halo slices + in-kernel padding.
    h1 = h1.reshape(n, d, h * w, mid_p)
    h2 = conv2_3x3x3_bn_relu(h1, w2, s2, b2, n, d, h, w)
    h2 = h2.reshape(M, mid_p)

    # conv3 + bn3 + residual add + relu, fully fused (final output in f32).
    out = fused_matmul_bn(h2, w3, s3, b3, residual=sc, relu=True,
                          out_dtype=jnp.float32, tm_target=tm_target)

    out = out[:, :out_planes].reshape(n, d, h, w, out_planes)
    return jnp.transpose(out, (0, 4, 1, 2, 3))


# ------------------------ pure-JAX reference (check) ------------------------ #

def _bn_ref(x, bn, eps=1e-5):
    gamma, beta, mean, var = bn
    shp = (1, -1, 1, 1, 1)
    return (x - mean.reshape(shp)) / jnp.sqrt(var.reshape(shp) + eps) \
        * gamma.reshape(shp) + beta.reshape(shp)


def _conv3d_ref(x, w, padding):
    return jax.lax.conv_general_dilated(
        x, w, window_strides=(1, 1, 1), padding=padding,
        dimension_numbers=("NCDHW", "OIDHW", "NCDHW"))


def bottleneck_ref(x, params, in_planes, planes, expansion=4, eps=1e-5):
    out_planes = expansion * planes
    o = jax.nn.relu(_bn_ref(_conv3d_ref(x, params["w1"], "VALID"), params["bn1"], eps))
    o = jax.nn.relu(_bn_ref(_conv3d_ref(o, params["w2"], "SAME"), params["bn2"], eps))
    o = _bn_ref(_conv3d_ref(o, params["w3"], "VALID"), params["bn3"], eps)
    if in_planes != out_planes:
        sc = _bn_ref(_conv3d_ref(x, params["w_sc"], "VALID"), params["bn_sc"], eps)
    else:
        sc = x
    return jax.nn.relu(o + sc)


# ----------------------------------- main ----------------------------------- #

if __name__ == "__main__":
    key = jax.random.PRNGKey(0)
    k_x, k_p = jax.random.split(key)

    in_planes, planes, expansion = 8, 4, 4
    N, D, H, W = 2, 4, 8, 8                     # M = 512

    x = jax.random.normal(k_x, (N, in_planes, D, H, W), jnp.float32)
    params = init_bottleneck_params(k_p, in_planes, planes, expansion)

    out = jax.block_until_ready(
        bottleneck_forward(x, params, in_planes, planes, expansion))
    ref = jax.block_until_ready(
        bottleneck_ref(x, params, in_planes, planes, expansion))

    assert out.shape == (N, expansion * planes, D, H, W), out.shape
    max_err = float(jnp.max(jnp.abs(out - ref)))
    # bf16 activations/weights -> loosened tolerance vs. the f32 reference.
    assert jnp.allclose(out, ref, rtol=5e-2, atol=5e-2), max_err

    print("KERNEL_OK")
</pallas_src>

<mosaic_0001>
module attributes {stable_mosaic.version = 11 : i64} {
  func.func @_conv1_shortcut_kernel(%arg0: i32, %arg1: memref<256x128xbf16, #tpu.memory_space<vmem>>, %arg2: memref<128x256xbf16, #tpu.memory_space<vmem>>, %arg3: memref<1x128xf32, #tpu.memory_space<vmem>>, %arg4: memref<1x128xf32, #tpu.memory_space<vmem>>, %arg5: memref<1x128xf32, #tpu.memory_space<vmem>>, %arg6: memref<1x128xf32, #tpu.memory_space<vmem>>, %arg7: memref<256x128xbf16, #tpu.memory_space<vmem>>, %arg8: memref<256x128xbf16, #tpu.memory_space<vmem>>) attributes {dimension_semantics = [#tpu.dimension_semantics<parallel>], iteration_bounds = array<i64: 2>, scalar_prefetch = 0 : i64, scratch_operands = 0 : i64, tpu.core_type = #tpu.core_type<tc>, window_params = [{transform_indices = @transform_0, window_bounds = array<i64: 256, 128>}, {pipeline_mode = #tpu.pipeline_mode<synchronous>, transform_indices = @transform_1, window_bounds = array<i64: 128, 256>}, {pipeline_mode = #tpu.pipeline_mode<synchronous>, transform_indices = @transform_2, window_bounds = array<i64: 1, 128>}, {pipeline_mode = #tpu.pipeline_mode<synchronous>, transform_indices = @transform_3, window_bounds = array<i64: 1, 128>}, {pipeline_mode = #tpu.pipeline_mode<synchronous>, transform_indices = @transform_4, window_bounds = array<i64: 1, 128>}, {pipeline_mode = #tpu.pipeline_mode<synchronous>, transform_indices = @transform_5, window_bounds = array<i64: 1, 128>}, {transform_indices = @transform_6, window_bounds = array<i64: 256, 128>}, {transform_indices = @transform_7, window_bounds = array<i64: 256, 128>}]} {
    %c0 = arith.constant 0 : index
    %c0_0 = arith.constant 0 : index
    %0 = vector.load %arg1[%c0, %c0_0] : memref<256x128xbf16, #tpu.memory_space<vmem>>, vector<256x128xbf16>
    %c0_1 = arith.constant 0 : index
    %c0_2 = arith.constant 0 : index
    %1 = vector.load %arg2[%c0_1, %c0_2] : memref<128x256xbf16, #tpu.memory_space<vmem>>, vector<128x256xbf16>
    %cst = arith.constant dense<0.000000e+00> : vector<256x256xf32>
    %2 = tpu.matmul %0, %1, %cst {dimension_numbers = #tpu.dot_dimension_numbers<[1], [0], [0], [1], [0, 0, 1, 1], [], []>} : vector<256x128xbf16>, vector<128x256xbf16>, vector<256x256xf32> -> vector<256x256xf32>
    %3 = vector.extract_strided_slice %2 {offsets = [0, 0], sizes = [256, 128], strides = [1, 1]} : vector<256x256xf32> to vector<256x128xf32>
    %c0_3 = arith.constant 0 : index
    %c0_4 = arith.constant 0 : index
    %4 = vector.load %arg3[%c0_3, %c0_4] : memref<1x128xf32, #tpu.memory_space<vmem>>, vector<1x128xf32>
    %5 = vector.broadcast %4 : vector<1x128xf32> to vector<256x128xf32>
    %6 = arith.mulf %3, %5 : vector<256x128xf32>
    %c0_5 = arith.constant 0 : index
    %c0_6 = arith.constant 0 : index
    %7 = vector.load %arg4[%c0_5, %c0_6] : memref<1x128xf32, #tpu.memory_space<vmem>>, vector<1x128xf32>
    %8 = vector.broadcast %7 : vector<1x128xf32> to vector<256x128xf32>
    %9 = arith.addf %6, %8 : vector<256x128xf32>
    %cst_7 = arith.constant 0.000000e+00 : f32
    %10 = vector.broadcast %cst_7 : f32 to vector<256x128xf32>
    %11 = arith.maximumf %9, %10 : vector<256x128xf32>
    %12 = arith.truncf %11 : vector<256x128xf32> to vector<256x128xbf16>
    %c0_8 = arith.constant 0 : index
    %c0_9 = arith.constant 0 : index
    %13 = vector.load %arg7[%c0_8, %c0_9] : memref<256x128xbf16, #tpu.memory_space<vmem>>, vector<256x128xbf16>
    tpu.vector_store %arg7[%c0_8, %c0_9], %12 {strides = array<i32>} : memref<256x128xbf16, #tpu.memory_space<vmem>>, vector<256x128xbf16>,
    %14 = vector.extract_strided_slice %2 {offsets = [0, 128], sizes = [256, 128], strides = [1, 1]} : vector<256x256xf32> to vector<256x128xf32>
    %c0_10 = arith.constant 0 : index
    %c0_11 = arith.constant 0 : index
    %15 = vector.load %arg5[%c0_10, %c0_11] : memref<1x128xf32, #tpu.memory_space<vmem>>, vector<1x128xf32>
    %16 = vector.broadcast %15 : vector<1x128xf32> to vector<256x128xf32>
    %17 = arith.mulf %14, %16 : vector<256x128xf32>
    %c0_12 = arith.constant 0 : index
    %c0_13 = arith.constant 0 : index
    %18 = vector.load %arg6[%c0_12, %c0_13] : memref<1x128xf32, #tpu.memory_space<vmem>>, vector<1x128xf32>
    %19 = vector.broadcast %18 : vector<1x128xf32> to vector<256x128xf32>
    %20 = arith.addf %17, %19 : vector<256x128xf32>
    %21 = arith.truncf %20 : vector<256x128xf32> to vector<256x128xbf16>
    %c0_14 = arith.constant 0 : index
    %c0_15 = arith.constant 0 : index
    %22 = vector.load %arg8[%c0_14, %c0_15] : memref<256x128xbf16, #tpu.memory_space<vmem>>, vector<256x128xbf16>
    tpu.vector_store %arg8[%c0_14, %c0_15], %21 {strides = array<i32>} : memref<256x128xbf16, #tpu.memory_space<vmem>>, vector<256x128xbf16>,
    return
  }
  func.func @transform_0(%arg0: i32) -> (i32, i32) {
    %c0_i32 = arith.constant 0 : i32
    %c0_i32_0 = arith.constant 0 : i32
    return %arg0, %c0_i32 : i32, i32
  }
  func.func @transform_1(%arg0: i32) -> (i32, i32) {
    %c0_i32 = arith.constant 0 : i32
    %c0_i32_0 = arith.constant 0 : i32
    %c0_i32_1 = arith.constant 0 : i32
    return %c0_i32, %c0_i32_0 : i32, i32
  }
  func.func @transform_2(%arg0: i32) -> (i32, i32) {
    %c0_i32 = arith.constant 0 : i32
    %c0_i32_0 = arith.constant 0 : i32
    %c0_i32_1 = arith.constant 0 : i32
    return %c0_i32, %c0_i32_0 : i32, i32
  }
  func.func @transform_3(%arg0: i32) -> (i32, i32) {
    %c0_i32 = arith.constant 0 : i32
    %c0_i32_0 = arith.constant 0 : i32
    %c0_i32_1 = arith.constant 0 : i32
    return %c0_i32, %c0_i32_0 : i32, i32
  }
  func.func @transform_4(%arg0: i32) -> (i32, i32) {
    %c0_i32 = arith.constant 0 : i32
    %c0_i32_0 = arith.constant 0 : i32
    %c0_i32_1 = arith.constant 0 : i32
    return %c0_i32, %c0_i32_0 : i32, i32
  }
  func.func @transform_5(%arg0: i32) -> (i32, i32) {
    %c0_i32 = arith.constant 0 : i32
    %c0_i32_0 = arith.constant 0 : i32
    %c0_i32_1 = arith.constant 0 : i32
    return %c0_i32, %c0_i32_0 : i32, i32
  }
  func.func @transform_6(%arg0: i32) -> (i32, i32) {
    %c0_i32 = arith.constant 0 : i32
    %c0_i32_0 = arith.constant 0 : i32
    return %arg0, %c0_i32 : i32, i32
  }
  func.func @transform_7(%arg0: i32) -> (i32, i32) {
    %c0_i32 = arith.constant 0 : i32
    %c0_i32_0 = arith.constant 0 : i32
    return %arg0, %c0_i32 : i32, i32
  }
}

</mosaic_0001>

<bundles_post_ra>
// kernel: tpu_custom_call.1
= control target key start
LH: loop header
LB: loop body
LE: loop exit
PB: predicated region body
PF: predicated region fallthrough
CT: control target
= control target key end

     0   :  { %s2545_s0 = inlined_call_operand.hbm [shape: bf16[512,128], index: 0, kind: input, shape index: {}]   ;;  %s2546_s1 = inlined_call_operand.hbm [shape: bf16[128,256], index: 1, kind: input, shape index: {}]   ;;  %s2547_s2 = inlined_call_operand.vmem [shape: f32[1,128], index: 2, kind: input, shape index: {}]   ;;  %s2548_s3 = inlined_call_operand.vmem [shape: f32[1,128], index: 3, kind: input, shape index: {}]   ;;  %s2549_s4 = inlined_call_operand.vmem [shape: f32[1,128], index: 4, kind: input, shape index: {}]   ;;  %s2550_s5 = inlined_call_operand.vmem [shape: f32[1,128], index: 5, kind: input, shape index: {}]   ;;  %s2551_s6 = inlined_call_operand.hbm [shape: bf16[512,128], index: 6, kind: output, shape index: {0}]   ;;  %s2552_s7 = inlined_call_operand.hbm [shape: bf16[512,128], index: 7, kind: output, shape index: {1}]  }
   0x1   :  { %2557 = sst [smem:[#allocation14_spill]] %s2546_s1 }
   0x2   :  { %13 = vsyncpa [#allocation3], 0 }
   0x3   :  { %15 = vsyncpa [#allocation3 + $0x1], 0 }
   0x4   :  { %16 = vsyncpa [#allocation6], 0 }
   0x5   :  { %17 = vsyncpa [#allocation4], 0 }
   0x6   :  { %19 = vsyncpa [#allocation4 + $0x1], 0 }
   0x7   :  { %20 = vsyncpa [#allocation9], 0 }
   0x8   :  { %22 = vsyncpa [#allocation9 + $0x1], 0  ;;  %s2109_s24 = smov 0   ;;  %s2111_s25 = smov 0  }
   0x9   :  { %s2113_s26 = smov 0   ;;  %s2115_s27 = smov 0  }
   0xa LB: > { %s2130_s28 = sadd.s32 4294967295, %s2056_s27   ;;  %s1402_s29 = sadd.s32 4294967294, %s2056_s27   ;;  %s2056_s27 = sphi %s2115_s27, %s2576_s27   ;;  %s2052_s26 = sphi %s2113_s26, %s2575_s26   ;;  %s2048_s25 = sphi %s2111_s25, %s2574_s25   ;;  %s2044_s24 = sphi %s2109_s24, %s2573_s24  }
   0xb   : > { %p48_p0 = scmp.ne.s32.totalorder %s2048_s25, %s2044_s24  ;;  %p2553_p1 = scmp.eq.s32.totalorder %s2130_s28, 0 }
   0xc   : > { %p183_p3 = scmp.eq.s32.totalorder %s1402_s29, 1  ;;  %p1403_p5 = scmp.ge.s32.totalorder %s2056_s27, 1 }
   0xd   : > { %p2139_p4 = por %p2553_p1, %p48_p0  ;;  %p216_p7 = scmp.lt.s32.totalorder %s2056_s27, 3 }
   0xe   : > { %p2144_p6 = por %p183_p3, %p48_p0  ;;  %s2058_s10 = smov [#allocation5]  }
   0xf   : > { %s2558_s30 = scalar_select %p2139_p4, 1, 0 }
  0x10   : > { %s2559_s8 = scalar_select %p2144_p6, 1, 0 }
  0x11   : > { %p2149_p8 = pnand %p1403_p5, %p216_p7  ;;  %s228_s11 = sshll.u32 %s2058_s10, 4  ;;  %s229_s11 = int_to_ptr.vmem [resolvable:$true] %s228_s11 }
  0x12   : > { %s2163_s13 = sadd.s32 1, %s2056_s27   ;;  %s35_s14 = sadd.s32 1, %s2052_s26 }
  0x13   : > { %s2560_s9 = scalar_select %p2149_p8, 1, 0 }
  0x14   : > { %p1805_p9 = pneg %p2149_p8  ;;  %s32_s15 = ssub.s32 %s2056_s27, %s2163_s13 }
  0x15   : > { %s1915_s16 = scalar_lea.vmem %s229_s11, 2048  ;;  %p1923_p5 = scmp.lt.s32.totalorder %s229_s11, %s229_s11 }
  0x16   : > { %p2158_p11 = pnand %p1805_p9, %p2553_p1  ;;  %p1916_p13 = scmp.ne.s32.totalorder %s229_s11, %s1915_s16 }
  0x17   : > { %p1924_p7 = scmp.lt.s32.totalorder %s1915_s16, %s1915_s16 }
  0x18   : > { %p1906_p12 = pneg %p2158_p11 }
  0x19   : > { %p1925_p10 = por %p1924_p7, %p1923_p5 }
  0x1a   : > { %p1918_p0 = pnand %p1916_p13, %p1906_p12 }
  0x1c   : > { %p1919_p3 = pneg %p1918_p0 }
  0x1e   : > { %p1926_p2 = pnand %p1925_p10, %p1919_p3 }
  0x20   : > { %1929 = shalt.err (!%p1926_p2)
}
  0x21   : > { %s2059_s17 = smov 128   ;;  %s2060_s18 = smov 8  }
  0x22   : > { %s2562_s1 = sld [smem:[#allocation14_spill]]  ;;  %p33_p9 = scmp.eq.s32.totalorder %s32_s15, 0 }
  0x23   : > { %p42_p12 = scmp.ne.s32.totalorder %s2052_s26, %s2048_s25  ;;  %p43_p10 = scmp.eq.s32.totalorder %s2056_s27, 0 }
  0x24   : > { %p1821_p2 = scmp.lt.s32.totalorder %s2056_s27, 2  ;;  %p2563_p0 = scmp.eq.s32.totalorder %s2130_s28, 1 }
  0x25   : > { %s2180_s21 = scalar_select %p33_p9, %s2052_s26, %s35_s14  }
  0x26   : > { %p44_p13 = por %p43_p10, %p42_p12  ;;  %p2184_p3 = por %p2563_p0, %p42_p12 }
  0x27   : > { %s254_s23 = sand.u32 1, %s2052_s26   ;;  %s1522_s29 = sshll.u32 %s2056_s27, 11 }
  0x28   : > { %1808 = dma.hbm_to_vmem [thread:$0]  (!%p2158_p11), %s2562_s1, 2048, %s229_s11, [#allocation6], %s2059_s17, %s2059_s17, %s2060_s18  }
  0x29   : > { %s2564_s22 = scalar_select %p2184_p3, 1, 0 }
  0x2a   : > { %s1406_s10 = sshll.u32 %s254_s23, 7  ;;  %s2193_s19 = scalar_lea.hbm %s2545_s0, %s1522_s29 }
  0x2b   : > { %s258_s11 = scalar_lea.vmem [#allocation2], %s1406_s10  ;;  %p2195_p11 = pnand %p1821_p2, %p44_p13 }
  0x2c   : > { %s265_s14 = sshll.u32 %s258_s11, 4  ;;  %s2201_s17 = scalar_lea.sflag [#allocation3], %s254_s23  ;;  %s2199_s14 = int_to_ptr.vmem [resolvable:$true] %s265_s14 }
  0x2d   : > { %s1930_s18 = scalar_lea.hbm %s2193_s19, 2048  ;;  %p1932_p7 = pneg %p2195_p11 }
  0x2e   : > { %p1931_p5 = scmp.ne.s32.totalorder %s2193_s19, %s1930_s18  ;;  %s1935_s10 = scalar_lea.hbm %s2545_s0, 4096 }
  0x2f   : > { %p1936_p10 = scmp.lt.s32.totalorder %s2193_s19, %s2545_s0  ;;  %p1937_p2 = scmp.lt.s32.totalorder %s1935_s10, %s1930_s18 }
  0x30   : > { %p1933_p9 = pnand %p1932_p7, %p1931_p5 }
  0x31   : > { %p1938_p13 = por %p1937_p2, %p1936_p10 }
  0x32   : > { %p1934_p12 = pneg %p1933_p9 }
  0x34   : > { %p1939_p0 = pnand %p1938_p13, %p1934_p12 }
  0x36   : > { %1942 = shalt.err (!%p1939_p0)
}
  0x37   : > { %s1943_s23 = scalar_lea.vmem %s2199_s14, 2048  ;;  %s2061_s11 = smov [#allocation2]  }
  0x38   : > { %p1944_p1 = scmp.ne.s32.totalorder %s2199_s14, %s1943_s23  ;;  %s1948_s1 = sshll.u32 %s2061_s11, 4  ;;  %s1949_s1 = int_to_ptr.vmem [resolvable:$false] %s1948_s1 }
  0x39   : > { %s1950_s20 = scalar_lea.vmem %s1949_s1, 4096  ;;  %p1951_p9 = scmp.lt.s32.totalorder %s2199_s14, %s1949_s1 }
  0x3a   : > { %p1946_p6 = pnand %p1944_p1, %p1932_p7  ;;  %p1952_p3 = scmp.lt.s32.totalorder %s1950_s20, %s1943_s23 }
  0x3c   : > { %p1947_p5 = pneg %p1946_p6  ;;  %p1953_p4 = por %p1952_p3, %p1951_p9 }
  0x3e   : > { %p1954_p8 = pnand %p1953_p4, %p1947_p5 }
  0x40   : > { %1957 = shalt.err (!%p1954_p8)
}
  0x41   : > { %s2062_s18 = smov 64   ;;  %s2063_s29 = smov 4  }
  0x42   : > { %1812 = dma.hbm_to_vmem [thread:$0]  (!%p2195_p11), %s2193_s19, 2048, %s2199_s14, %s2201_s17, %s2062_s18, %s2062_s18, %s2063_s29  }
  0x43   : > { %p2566_p1 = scmp.ne.s32.totalorder %s2560_s9, 0 }
  0x44   : > { %s2225_s10 = sand.u32 (!%p2566_p1), 1, %s2048_s25   ;;  %p2567_p4 = scmp.ne.s32.totalorder (!%p2566_p1), %s2558_s30, 0 }
  0x45   : > { %277 = sbr.rel (%p2566_p1) target bundleno = 410 (0x19a), region = 44  ;;  %s2228_s1 = sshll.u32 (!%p2566_p1), %s2225_s10, 7 }
  0x46   : > { %s280_s12 = scalar_lea.sflag (!%p2566_p1), [#allocation3], %s2225_s10  ;;  %s2232_s16 = scalar_lea.vmem (!%p2566_p1), [#allocation2], %s2228_s1 }
  0x4a   : > { %2027 = dma.done.wait (%p2567_p4), %s280_s12, 2048  }
  0x4b   : > { %2029 = vsyncadd (%p2567_p4), %s280_s12, 4294965248  ;;  %p2568_p6 = scmp.eq.s32.totalorder %s2130_s28, 0 }
  0x4d   : > { %2031 = dma.done.wait (%p2568_p6), [#allocation6], 2048   ;;  %p2569_p8 = pmov %p2568_p6 }
  0x4e   : > { %v2064_v0 = vmov 0   ;;  %v1864_v1 = vld [vmem:[#allocation5 + $0x74] ss:$8 sps:$4 sm:$0xff]   ;;  %v1866_v2 = vld [vmem:[#allocation5 + $0x70] ss:$8 sps:$4 sm:$0xff]   ;;  %v1888_v17 = vld [vmem:[%s2232_s16] sm:$0xff]  }
  0x4f   : > { %2033 = vsyncadd (%p2569_p8), [#allocation6], 4294965248  ;;  %583 = vmatprep.mubr.bf16.mxu0 %v2064_v0  ;;  %663 = vmatprep.mubr.bf16.mxu1 %v2064_v0  ;;  %v1867_v3 = vld [vmem:[#allocation5 + $0x64] ss:$8 sps:$4 sm:$0xff]   ;;  %v1869_v4 = vld [vmem:[#allocation5 + $0x60] ss:$8 sps:$4 sm:$0xff]  }
  0x50   : > { %551 = vmatprep.subr.bf16.mxu0 %v1864_v1  ;;  %1779 = vmatprep.subr.bf16.mxu1 %v1864_v1  ;;  %v1870_v5 = vld [vmem:[#allocation5 + $0x54] ss:$8 sps:$4 sm:$0xff]   ;;  %v1872_v6 = vld [vmem:[#allocation5 + $0x50] ss:$8 sps:$4 sm:$0xff]   ;;  %v1873_v7 = vld [vmem:[#allocation5 + $0x44] ss:$8 sps:$4 sm:$0xff]  }
  0x51   : > { %552 = vmatpush1.bf16.msra.mxu0 %v1866_v2  ;;  %1787 = vmatpush1.bf16.msra.mxu1 %v1866_v2  ;;  %v1875_v8 = vld [vmem:[#allocation5 + $0x40] ss:$8 sps:$4 sm:$0xff]   ;;  %v1876_v9 = vld [vmem:[#allocation5 + $0x34] ss:$8 sps:$4 sm:$0xff]   ;;  %v1878_v10 = vld [vmem:[#allocation5 + $0x30] ss:$8 sps:$4 sm:$0xff]  }
  0x52   : > { %553 = vmatprep.subr.bf16.mxu0 %v1867_v3  ;;  %1780 = vmatprep.subr.bf16.mxu1 %v1867_v3  ;;  %v1879_v11 = vld [vmem:[#allocation5 + $0x24] ss:$8 sps:$4 sm:$0xff]   ;;  %v1881_v12 = vld [vmem:[#allocation5 + $0x20] ss:$8 sps:$4 sm:$0xff]   ;;  %v1882_v13 = vld [vmem:[#allocation5 + $0x14] ss:$8 sps:$4 sm:$0xff]  }
  0x53   : > { %v1884_v14 = vld [vmem:[#allocation5 + $0x10] ss:$8 sps:$4 sm:$0xff]   ;;  %v1885_v15 = vld [vmem:[#allocation5 + $0x4] ss:$8 sps:$4 sm:$0xff]   ;;  %v1887_v16 = vld [vmem:[#allocation5] ss:$8 sps:$4 sm:$0xff]  }
  0x54   : > { %v1889_v18 = vld [vmem:[%s2232_s16 + $0x40] sm:$0xff]   ;;  %v1890_v19 = vld [vmem:[%s2232_s16 + $0x8] sm:$0xff]   ;;  %v1892_v21 = vld [vmem:[%s2232_s16 + $0x10] sm:$0xff]   ;;  %s2317_s20 = scalar_lea.vmem [#allocation8], %s2228_s1  ;;  %s2324_s18 = scalar_lea.vmem [#allocation7], %s2228_s1 }
  0x55   : > { %554 = vmatpush1.bf16.msra.mxu0 %v1869_v4  ;;  %1788 = vmatpush1.bf16.msra.mxu1 %v1869_v4  ;;  %v1891_v20 = vld [vmem:[%s2232_s16 + $0x48] sm:$0xff]   ;;  %v1893_v22 = vld [vmem:[%s2232_s16 + $0x50] sm:$0xff]   ;;  %v1894_v23 = vld [vmem:[%s2232_s16 + $0x18] sm:$0xff]   ;;  %s1587_s29 = sshll.u32 %s2130_s28, 11  ;;  %s1271_s1 = sshll.u32 %s2324_s18, 4  ;;  %s2464_s1 = int_to_ptr.vmem [resolvable:$true] %s1271_s1 }
  0x56   : > { %555 = vmatprep.subr.bf16.mxu0 %v1870_v5  ;;  %1781 = vmatprep.subr.bf16.mxu1 %v1870_v5  ;;  %v1895_v24 = vld [vmem:[%s2232_s16 + $0x58] sm:$0xff]   ;;  %v1896_v25 = vld [vmem:[%s2232_s16 + $0x20] sm:$0xff]   ;;  %v1898_v27 = vld [vmem:[%s2232_s16 + $0x28] sm:$0xff]   ;;  %s1287_s30 = sshll.u32 %s2317_s20, 4  ;;  %s2469_s14 = scalar_lea.hbm %s2552_s7, %s1587_s29  ;;  %s2471_s30 = int_to_ptr.vmem [resolvable:$true] %s1287_s30 }
  0x57   : > { %v1897_v26 = vld [vmem:[%s2232_s16 + $0x60] sm:$0xff]   ;;  %v1899_v28 = vld [vmem:[%s2232_s16 + $0x68] sm:$0xff]   ;;  %v1900_v29 = vld [vmem:[%s2232_s16 + $0x30] sm:$0xff]   ;;  %s1253_s15 = scalar_lea.sflag [#allocation4], %s2225_s10  ;;  %s1958_s17 = scalar_lea.vmem %s2464_s1, 2048 }
  0x58   : > { %v1901_v30 = vld [vmem:[%s2232_s16 + $0x70] sm:$0xff]   ;;  %v1902_v31 = vld [vmem:[%s2232_s16 + $0x38] sm:$0xff]   ;;  %v2277_v33 = vld [vmem:[%s2547_s2] ss:$0 sm:$0xff]  ;;  %p1959_p3 = scmp.ne.s32.totalorder %s2464_s1, %s1958_s17  ;;  %p2570_p11 = scmp.ne.s32.totalorder %s2564_s22, 0 }
  0x59   : > { %556 = vmatpush1.bf16.msra.mxu0 %v1872_v6  ;;  %1789 = vmatpush1.bf16.msra.mxu1 %v1872_v6  ;;  %v1903_v32 = vld [vmem:[%s2232_s16 + $0x78] sm:$0xff]   ;;  %v2282_v36 = vld [vmem:[%s2549_s4] ss:$0 sm:$0xff]  ;;  %s2461_s16 = scalar_lea.hbm %s2551_s6, %s1587_s29  ;;  %s2065_s23 = smov [#allocation7]  }
  0x5a   : > { %557 = vmatprep.subr.bf16.mxu0 %v1873_v7  ;;  %1782 = vmatprep.subr.bf16.mxu1 %v1873_v7  ;;  %v2289_v41 = vld [vmem:[%s2548_s3] ss:$0 sm:$0xff]  ;;  %p1960_p7 = pnand %p1959_p3, %p2570_p11  ;;  %s1962_s11 = sshll.u32 %s2065_s23, 4  ;;  %s1963_s11 = int_to_ptr.vmem [resolvable:$false] %s1962_s11 }
  0x5b   : > { %v2296_v46 = vld [vmem:[%s2550_s5] ss:$0 sm:$0xff]  ;;  %s1964_s28 = scalar_lea.vmem %s1963_s11, 4096  ;;  %p1965_p10 = scmp.lt.s32.totalorder %s2464_s1, %s1963_s11 }
  0x5c   : > { %p1961_p12 = pneg %p1960_p7  ;;  %p1966_p2 = scmp.lt.s32.totalorder %s1964_s28, %s1958_s17 }
  0x5d   : > { %558 = vmatpush1.bf16.msra.mxu0 %v1875_v8  ;;  %1790 = vmatpush1.bf16.msra.mxu1 %v1875_v8 }
  0x5e   : > { %559 = vmatprep.subr.bf16.mxu0 %v1876_v9  ;;  %1783 = vmatprep.subr.bf16.mxu1 %v1876_v9  ;;  %p1967_p13 = por %p1966_p2, %p1965_p10 }
  0x60   : > { %p1968_p0 = pnand %p1967_p13, %p1961_p12 }
  0x61   : > { %560 = vmatpush1.bf16.msra.mxu0 %v1878_v10  ;;  %1791 = vmatpush1.bf16.msra.mxu1 %v1878_v10 }
  0x62   : > { %561 = vmatprep.subr.bf16.mxu0 %v1879_v11  ;;  %1784 = vmatprep.subr.bf16.mxu1 %v1879_v11 }
  0x65   : > { %562 = vmatpush1.bf16.msra.mxu0 %v1881_v12  ;;  %1792 = vmatpush1.bf16.msra.mxu1 %v1881_v12 }
  0x66   : > { %563 = vmatprep.subr.bf16.mxu0 %v1882_v13  ;;  %1785 = vmatprep.subr.bf16.mxu1 %v1882_v13 }
  0x69   : > { %564 = vmatpush1.bf16.msra.mxu0 %v1884_v14  ;;  %1793 = vmatpush1.bf16.msra.mxu1 %v1884_v14 }
  0x6a   : > { %565 = vmatprep.subr.bf16.mxu0 %v1885_v15  ;;  %1786 = vmatprep.subr.bf16.mxu1 %v1885_v15 }
  0x6d   : > { %566 = vmatpush1.bf16.msra.mxu0 %v1887_v16  ;;  %1794 = vmatpush1.bf16.msra.mxu1 %v1887_v16 }
  0x70   : > { %584 = vmatmul.mubr.bf16.vlgmr.msra.gmra.mxu0 %v1888_v17  ;;  %664 = vmatmul.mubr.bf16.vlgmr.msra.gmra.mxu1 %v1889_v18 }
  0x71   : > { %593 = vmatprep.mubr.bf16.mxu0 %v2064_v0  ;;  %673 = vmatprep.mubr.bf16.mxu1 %v2064_v0 }
  0x78   : > { %594 = vmatmul.mubr.bf16.gmra.mxu0 %v1890_v19  ;;  %674 = vmatmul.mubr.bf16.gmra.mxu1 %v1891_v20 }
  0x79   : > { %603 = vmatprep.mubr.bf16.mxu0 %v2064_v0  ;;  %683 = vmatprep.mubr.bf16.mxu1 %v2064_v0 }
  0x80   : > { %604 = vmatmul.mubr.bf16.gmra.mxu0 %v1892_v21  ;;  %684 = vmatmul.mubr.bf16.gmra.mxu1 %v1893_v22 }
  0x81   : > { %613 = vmatprep.mubr.bf16.mxu0 %v2064_v0  ;;  %693 = vmatprep.mubr.bf16.mxu1 %v2064_v0 }
  0x88   : > { %614 = vmatmul.mubr.bf16.gmra.mxu0 %v1894_v23  ;;  %694 = vmatmul.mubr.bf16.gmra.mxu1 %v1895_v24 }
  0x89   : > { %623 = vmatprep.mubr.bf16.mxu0 %v2064_v0  ;;  %703 = vmatprep.mubr.bf16.mxu1 %v2064_v0 }
  0x90   : > { %624 = vmatmul.mubr.bf16.gmra.mxu0 %v1896_v25  ;;  %704 = vmatmul.mubr.bf16.gmra.mxu1 %v1897_v26 }
  0x91   : > { %633 = vmatprep.mubr.bf16.mxu0 %v2064_v0  ;;  %713 = vmatprep.mubr.bf16.mxu1 %v2064_v0 }
  0x98   : > { %634 = vmatmul.mubr.bf16.gmra.mxu0 %v1898_v27  ;;  %714 = vmatmul.mubr.bf16.gmra.mxu1 %v1899_v28 }
  0x99   : > { %643 = vmatprep.mubr.bf16.mxu0 %v2064_v0  ;;  %723 = vmatprep.mubr.bf16.mxu1 %v2064_v0 }
  0xa0   : > { %644 = vmatmul.mubr.bf16.gmra.mxu0 %v1900_v29  ;;  %724 = vmatmul.mubr.bf16.gmra.mxu1 %v1901_v30 }
  0xa1   : > { %653 = vmatprep.mubr.bf16.mxu0 %v2064_v0  ;;  %733 = vmatprep.mubr.bf16.mxu1 %v2064_v0 }
  0xa8   : > { %654 = vmatmul.mubr.bf16.gmra.mxu0 %v1902_v31  ;;  %734 = vmatmul.mubr.bf16.gmra.mxu1 %v1903_v32 }
 0x130   : > { %v585_v34 = vpop.f32.mrf.mxu0  ;;  %v665_v35 = vpop.f32.mrf.mxu1 }
 0x131   : > { %v751_v37 = vmul.f32 %v2277_v33, %v585_v34  ;;  %v767_v38 = vmul.f32 %v2277_v33, %v665_v35 }
 0x132   : > { %v587_v39 = vpop.f32.mrf.mxu0  ;;  %v667_v40 = vpop.f32.mrf.mxu1 }
 0x133   : > { %v1021_v42 = vmul.f32 %v2282_v36, %v587_v39  ;;  %v1037_v43 = vmul.f32 %v2282_v36, %v667_v40  ;;  %v790_v47 = vadd.f32 %v2289_v41, %v751_v37  ;;  %v806_v48 = vadd.f32 %v2289_v41, %v767_v38 }
 0x134   : > { %v589_v44 = vpop.f32.mrf.mxu0  ;;  %v669_v45 = vpop.f32.mrf.mxu1 }
 0x135   : > { %v752_v49 = vmul.f32 %v2277_v33, %v589_v44  ;;  %v768_v50 = vmul.f32 %v2277_v33, %v669_v45  ;;  %v1060_v55 = vadd.f32 %v2296_v46, %v1021_v42  ;;  %v1076_v56 = vadd.f32 %v2296_v46, %v1037_v43 }
 0x136   : > { %v591_v51 = vpop.f32.mrf.mxu0  ;;  %v671_v52 = vpop.f32.mrf.mxu1  ;;  %v822_v1 = vmax.f32 %v790_v47, 0.0  ;;  %v838_v2 = vmax.f32 %v806_v48, 0.0 }
 0x137   : > { %v1022_v53 = vmul.f32 %v2282_v36, %v591_v51  ;;  %v1038_v54 = vmul.f32 %v2282_v36, %v671_v52  ;;  %v791_v57 = vadd.f32 %v2289_v41, %v752_v49  ;;  %v807_v58 = vadd.f32 %v2289_v41, %v768_v50 }
 0x138   : > { %v595_v59 = vpop.f32.mrf.mxu0  ;;  %v675_v60 = vpop.f32.mrf.mxu1 }
 0x139   : > { %v1061_v61 = vadd.f32 %v2296_v46, %v1022_v53  ;;  %v1077_v62 = vadd.f32 %v2296_v46, %v1038_v54  ;;  %v753_v63 = vmul.f32 %v2277_v33, %v595_v59  ;;  %v769_v0 = vmul.f32 %v2277_v33, %v675_v60 }
 0x13a   : > { %v823_v3 = vmax.f32 %v791_v57, 0.0  ;;  %v839_v4 = vmax.f32 %v807_v58, 0.0  ;;  %v597_v5 = vpop.f32.mrf.mxu0  ;;  %v677_v6 = vpop.f32.mrf.mxu1 }
 0x13b   : > { %v1672_v7 = vpack.c.bf16 %v1061_v61, %v1060_v55  ;;  %v1712_v8 = vpack.c.bf16 %v1077_v62, %v1076_v56  ;;  %v792_v9 = vadd.f32 %v2289_v41, %v753_v63  ;;  %v808_v10 = vadd.f32 %v2289_v41, %v769_v0 }
 0x13c   : > { %v1592_v11 = vpack.c.bf16 %v823_v3, %v822_v1  ;;  %v1632_v12 = vpack.c.bf16 %v839_v4, %v838_v2  ;;  %v1023_v13 = vmul.f32 %v2282_v36, %v597_v5  ;;  %v1039_v14 = vmul.f32 %v2282_v36, %v677_v6  ;;  %v599_v15 = vpop.f32.mrf.mxu0  ;;  %v679_v16 = vpop.f32.mrf.mxu1 }
 0x13d   : > { %1673 = vst [vmem:[%s2317_s20] sm:$0xff] %v1672_v7   ;;  %1771 = vst [vmem:[%s2317_s20 + $0x40] sm:$0xff] %v1712_v8   ;;  %v754_v17 = vmul.f32 %v2277_v33, %v599_v15  ;;  %v770_v18 = vmul.f32 %v2277_v33, %v679_v16  ;;  %v824_v25 = vmax.f32 %v792_v9, 0.0  ;;  %v840_v26 = vmax.f32 %v808_v10, 0.0 }
 0x13e   : > { %1593 = vst [vmem:[%s2324_s18] sm:$0xff] %v1592_v11   ;;  %1756 = vst [vmem:[%s2324_s18 + $0x40] sm:$0xff] %v1632_v12   ;;  %v601_v19 = vpop.f32.mrf.mxu0  ;;  %v681_v20 = vpop.f32.mrf.mxu1  ;;  %v1062_v27 = vadd.f32 %v2296_v46, %v1023_v13  ;;  %v1078_v28 = vadd.f32 %v2296_v46, %v1039_v14 }
 0x13f   : > { %v793_v21 = vadd.f32 %v2289_v41, %v754_v17  ;;  %v809_v22 = vadd.f32 %v2289_v41, %v770_v18  ;;  %v1024_v23 = vmul.f32 %v2282_v36, %v601_v19  ;;  %v1040_v24 = vmul.f32 %v2282_v36, %v681_v20 }
 0x140   : > { %v605_v29 = vpop.f32.mrf.mxu0  ;;  %v685_v30 = vpop.f32.mrf.mxu1 }
 0x141   : > { %v825_v31 = vmax.f32 %v793_v21, 0.0  ;;  %v841_v32 = vmax.f32 %v809_v22, 0.0  ;;  %v1063_v34 = vadd.f32 %v2296_v46, %v1024_v23  ;;  %v1079_v35 = vadd.f32 %v2296_v46, %v1040_v24 }
 0x142   : > { %v755_v37 = vmul.f32 %v2277_v33, %v605_v29  ;;  %v771_v38 = vmul.f32 %v2277_v33, %v685_v30  ;;  %v607_v39 = vpop.f32.mrf.mxu0  ;;  %v687_v40 = vpop.f32.mrf.mxu1 }
 0x143   : > { %v1597_v42 = vpack.c.bf16 %v825_v31, %v824_v25  ;;  %v1637_v43 = vpack.c.bf16 %v841_v32, %v840_v26  ;;  %v1677_v44 = vpack.c.bf16 %v1063_v34, %v1062_v27  ;;  %v1717_v45 = vpack.c.bf16 %v1079_v35, %v1078_v28 }
 0x144   : > { %v794_v47 = vadd.f32 %v2289_v41, %v755_v37  ;;  %v810_v48 = vadd.f32 %v2289_v41, %v771_v38  ;;  %v1025_v49 = vmul.f32 %v2282_v36, %v607_v39  ;;  %v1041_v50 = vmul.f32 %v2282_v36, %v687_v40  ;;  %v609_v51 = vpop.f32.mrf.mxu0  ;;  %v689_v52 = vpop.f32.mrf.mxu1 }
 0x145   : > { %1749 = vst [vmem:[%s2324_s18 + $0x8] sm:$0xff] %v1597_v42   ;;  %1757 = vst [vmem:[%s2324_s18 + $0x48] sm:$0xff] %v1637_v43   ;;  %v756_v53 = vmul.f32 %v2277_v33, %v609_v51  ;;  %v772_v54 = vmul.f32 %v2277_v33, %v689_v52 }
 0x146   : > { %1764 = vst [vmem:[%s2317_s20 + $0x8] sm:$0xff] %v1677_v44   ;;  %1772 = vst [vmem:[%s2317_s20 + $0x48] sm:$0xff] %v1717_v45   ;;  %v611_v55 = vpop.f32.mrf.mxu0  ;;  %v691_v56 = vpop.f32.mrf.mxu1  ;;  %v826_v61 = vmax.f32 %v794_v47, 0.0  ;;  %v842_v62 = vmax.f32 %v810_v48, 0.0  ;;  %v1064_v63 = vadd.f32 %v2296_v46, %v1025_v49  ;;  %v1080_v0 = vadd.f32 %v2296_v46, %v1041_v50 }
 0x147   : > { %v795_v57 = vadd.f32 %v2289_v41, %v756_v53  ;;  %v811_v58 = vadd.f32 %v2289_v41, %v772_v54  ;;  %v1026_v59 = vmul.f32 %v2282_v36, %v611_v55  ;;  %v1042_v60 = vmul.f32 %v2282_v36, %v691_v56 }
 0x148   : > { %v615_v1 = vpop.f32.mrf.mxu0  ;;  %v695_v2 = vpop.f32.mrf.mxu1 }
 0x149   : > { %v827_v3 = vmax.f32 %v795_v57, 0.0  ;;  %v843_v4 = vmax.f32 %v811_v58, 0.0  ;;  %v1065_v5 = vadd.f32 %v2296_v46, %v1026_v59  ;;  %v1081_v6 = vadd.f32 %v2296_v46, %v1042_v60 }
 0x14a   : > { %v757_v7 = vmul.f32 %v2277_v33, %v615_v1  ;;  %v773_v8 = vmul.f32 %v2277_v33, %v695_v2  ;;  %v617_v9 = vpop.f32.mrf.mxu0  ;;  %v697_v10 = vpop.f32.mrf.mxu1 }
 0x14b   : > { %v1602_v11 = vpack.c.bf16 %v827_v3, %v826_v61  ;;  %v1642_v12 = vpack.c.bf16 %v843_v4, %v842_v62  ;;  %v1682_v13 = vpack.c.bf16 %v1065_v5, %v1064_v63  ;;  %v1722_v14 = vpack.c.bf16 %v1081_v6, %v1080_v0 }
 0x14c   : > { %v796_v15 = vadd.f32 %v2289_v41, %v757_v7  ;;  %v812_v16 = vadd.f32 %v2289_v41, %v773_v8  ;;  %v1027_v17 = vmul.f32 %v2282_v36, %v617_v9  ;;  %v1043_v18 = vmul.f32 %v2282_v36, %v697_v10  ;;  %v619_v19 = vpop.f32.mrf.mxu0  ;;  %v699_v20 = vpop.f32.mrf.mxu1 }
 0x14d   : > { %1750 = vst [vmem:[%s2324_s18 + $0x10] sm:$0xff] %v1602_v11   ;;  %1758 = vst [vmem:[%s2324_s18 + $0x50] sm:$0xff] %v1642_v12   ;;  %v758_v21 = vmul.f32 %v2277_v33, %v619_v19  ;;  %v774_v22 = vmul.f32 %v2277_v33, %v699_v20 }
 0x14e   : > { %1765 = vst [vmem:[%s2317_s20 + $0x10] sm:$0xff] %v1682_v13   ;;  %1773 = vst [vmem:[%s2317_s20 + $0x50] sm:$0xff] %v1722_v14   ;;  %v621_v23 = vpop.f32.mrf.mxu0  ;;  %v701_v24 = vpop.f32.mrf.mxu1  ;;  %v828_v29 = vmax.f32 %v796_v15, 0.0  ;;  %v844_v30 = vmax.f32 %v812_v16, 0.0  ;;  %v1066_v31 = vadd.f32 %v2296_v46, %v1027_v17  ;;  %v1082_v32 = vadd.f32 %v2296_v46, %v1043_v18 }
 0x14f   : > { %v797_v25 = vadd.f32 %v2289_v41, %v758_v21  ;;  %v813_v26 = vadd.f32 %v2289_v41, %v774_v22  ;;  %v1028_v27 = vmul.f32 %v2282_v36, %v621_v23  ;;  %v1044_v28 = vmul.f32 %v2282_v36, %v701_v24 }
 0x150   : > { %v625_v34 = vpop.f32.mrf.mxu0  ;;  %v705_v35 = vpop.f32.mrf.mxu1 }
 0x151   : > { %v829_v37 = vmax.f32 %v797_v25, 0.0  ;;  %v845_v38 = vmax.f32 %v813_v26, 0.0  ;;  %v1067_v39 = vadd.f32 %v2296_v46, %v1028_v27  ;;  %v1083_v40 = vadd.f32 %v2296_v46, %v1044_v28 }
 0x152   : > { %v759_v42 = vmul.f32 %v2277_v33, %v625_v34  ;;  %v775_v43 = vmul.f32 %v2277_v33, %v705_v35  ;;  %v627_v44 = vpop.f32.mrf.mxu0  ;;  %v707_v45 = vpop.f32.mrf.mxu1 }
 0x153   : > { %v1607_v47 = vpack.c.bf16 %v829_v37, %v828_v29  ;;  %v1647_v48 = vpack.c.bf16 %v845_v38, %v844_v30  ;;  %v1687_v49 = vpack.c.bf16 %v1067_v39, %v1066_v31  ;;  %v1727_v50 = vpack.c.bf16 %v1083_v40, %v1082_v32 }
 0x154   : > { %v798_v51 = vadd.f32 %v2289_v41, %v759_v42  ;;  %v814_v52 = vadd.f32 %v2289_v41, %v775_v43  ;;  %v1029_v53 = vmul.f32 %v2282_v36, %v627_v44  ;;  %v1045_v54 = vmul.f32 %v2282_v36, %v707_v45  ;;  %v629_v55 = vpop.f32.mrf.mxu0  ;;  %v709_v56 = vpop.f32.mrf.mxu1 }
 0x155   : > { %1751 = vst [vmem:[%s2324_s18 + $0x18] sm:$0xff] %v1607_v47   ;;  %1759 = vst [vmem:[%s2324_s18 + $0x58] sm:$0xff] %v1647_v48   ;;  %v760_v57 = vmul.f32 %v2277_v33, %v629_v55  ;;  %v776_v58 = vmul.f32 %v2277_v33, %v709_v56 }
 0x156   : > { %1766 = vst [vmem:[%s2317_s20 + $0x18] sm:$0xff] %v1687_v49   ;;  %1774 = vst [vmem:[%s2317_s20 + $0x58] sm:$0xff] %v1727_v50   ;;  %v631_v59 = vpop.f32.mrf.mxu0  ;;  %v711_v60 = vpop.f32.mrf.mxu1  ;;  %v830_v1 = vmax.f32 %v798_v51, 0.0  ;;  %v846_v2 = vmax.f32 %v814_v52, 0.0  ;;  %v1068_v3 = vadd.f32 %v2296_v46, %v1029_v53  ;;  %v1084_v4 = vadd.f32 %v2296_v46, %v1045_v54 }
 0x157   : > { %v799_v61 = vadd.f32 %v2289_v41, %v760_v57  ;;  %v815_v62 = vadd.f32 %v2289_v41, %v776_v58  ;;  %v1030_v63 = vmul.f32 %v2282_v36, %v631_v59  ;;  %v1046_v0 = vmul.f32 %v2282_v36, %v711_v60 }
 0x158   : > { %v635_v5 = vpop.f32.mrf.mxu0  ;;  %v715_v6 = vpop.f32.mrf.mxu1 }
 0x159   : > { %v831_v7 = vmax.f32 %v799_v61, 0.0  ;;  %v847_v8 = vmax.f32 %v815_v62, 0.0  ;;  %v1069_v9 = vadd.f32 %v2296_v46, %v1030_v63  ;;  %v1085_v10 = vadd.f32 %v2296_v46, %v1046_v0 }
 0x15a   : > { %v761_v11 = vmul.f32 %v2277_v33, %v635_v5  ;;  %v777_v12 = vmul.f32 %v2277_v33, %v715_v6  ;;  %v637_v13 = vpop.f32.mrf.mxu0  ;;  %v717_v14 = vpop.f32.mrf.mxu1 }
 0x15b   : > { %v1612_v15 = vpack.c.bf16 %v831_v7, %v830_v1  ;;  %v1652_v16 = vpack.c.bf16 %v847_v8, %v846_v2  ;;  %v1692_v17 = vpack.c.bf16 %v1069_v9, %v1068_v3  ;;  %v1732_v18 = vpack.c.bf16 %v1085_v10, %v1084_v4 }
 0x15c   : > { %v800_v19 = vadd.f32 %v2289_v41, %v761_v11  ;;  %v816_v20 = vadd.f32 %v2289_v41, %v777_v12  ;;  %v1031_v21 = vmul.f32 %v2282_v36, %v637_v13  ;;  %v1047_v22 = vmul.f32 %v2282_v36, %v717_v14  ;;  %v639_v23 = vpop.f32.mrf.mxu0  ;;  %v719_v24 = vpop.f32.mrf.mxu1 }
 0x15d   : > { %1752 = vst [vmem:[%s2324_s18 + $0x20] sm:$0xff] %v1612_v15   ;;  %1760 = vst [vmem:[%s2324_s18 + $0x60] sm:$0xff] %v1652_v16   ;;  %v762_v25 = vmul.f32 %v2277_v33, %v639_v23  ;;  %v778_v26 = vmul.f32 %v2277_v33, %v719_v24 }
 0x15e   : > { %1767 = vst [vmem:[%s2317_s20 + $0x20] sm:$0xff] %v1692_v17   ;;  %1775 = vst [vmem:[%s2317_s20 + $0x60] sm:$0xff] %v1732_v18   ;;  %v641_v27 = vpop.f32.mrf.mxu0  ;;  %v721_v28 = vpop.f32.mrf.mxu1  ;;  %v832_v34 = vmax.f32 %v800_v19, 0.0  ;;  %v848_v35 = vmax.f32 %v816_v20, 0.0  ;;  %v1070_v37 = vadd.f32 %v2296_v46, %v1031_v21  ;;  %v1086_v38 = vadd.f32 %v2296_v46, %v1047_v22 }
 0x15f   : > { %v801_v29 = vadd.f32 %v2289_v41, %v762_v25  ;;  %v817_v30 = vadd.f32 %v2289_v41, %v778_v26  ;;  %v1032_v31 = vmul.f32 %v2282_v36, %v641_v27  ;;  %v1048_v32 = vmul.f32 %v2282_v36, %v721_v28 }
 0x160   : > { %v645_v39 = vpop.f32.mrf.mxu0  ;;  %v725_v40 = vpop.f32.mrf.mxu1 }
 0x161   : > { %v833_v42 = vmax.f32 %v801_v29, 0.0  ;;  %v849_v43 = vmax.f32 %v817_v30, 0.0  ;;  %v1071_v44 = vadd.f32 %v2296_v46, %v1032_v31  ;;  %v1087_v45 = vadd.f32 %v2296_v46, %v1048_v32 }
 0x162   : > { %v763_v47 = vmul.f32 %v2277_v33, %v645_v39  ;;  %v779_v48 = vmul.f32 %v2277_v33, %v725_v40  ;;  %v647_v49 = vpop.f32.mrf.mxu0  ;;  %v727_v50 = vpop.f32.mrf.mxu1 }
 0x163   : > { %v1617_v51 = vpack.c.bf16 %v833_v42, %v832_v34  ;;  %v1657_v52 = vpack.c.bf16 %v849_v43, %v848_v35  ;;  %v1697_v53 = vpack.c.bf16 %v1071_v44, %v1070_v37  ;;  %v1737_v54 = vpack.c.bf16 %v1087_v45, %v1086_v38 }
 0x164   : > { %v802_v55 = vadd.f32 %v2289_v41, %v763_v47  ;;  %v818_v56 = vadd.f32 %v2289_v41, %v779_v48  ;;  %v1033_v57 = vmul.f32 %v2282_v36, %v647_v49  ;;  %v1049_v58 = vmul.f32 %v2282_v36, %v727_v50  ;;  %v649_v59 = vpop.f32.mrf.mxu0  ;;  %v729_v60 = vpop.f32.mrf.mxu1 }
 0x165   : > { %1753 = vst [vmem:[%s2324_s18 + $0x28] sm:$0xff] %v1617_v51   ;;  %1761 = vst [vmem:[%s2324_s18 + $0x68] sm:$0xff] %v1657_v52   ;;  %v764_v61 = vmul.f32 %v2277_v33, %v649_v59  ;;  %v780_v62 = vmul.f32 %v2277_v33, %v729_v60 }
 0x166   : > { %1768 = vst [vmem:[%s2317_s20 + $0x28] sm:$0xff] %v1697_v53   ;;  %1776 = vst [vmem:[%s2317_s20 + $0x68] sm:$0xff] %v1737_v54   ;;  %v651_v63 = vpop.f32.mrf.mxu0  ;;  %v731_v0 = vpop.f32.mrf.mxu1  ;;  %v834_v5 = vmax.f32 %v802_v55, 0.0  ;;  %v850_v6 = vmax.f32 %v818_v56, 0.0  ;;  %v1072_v7 = vadd.f32 %v2296_v46, %v1033_v57  ;;  %v1088_v8 = vadd.f32 %v2296_v46, %v1049_v58 }
 0x167   : > { %v803_v1 = vadd.f32 %v2289_v41, %v764_v61  ;;  %v819_v2 = vadd.f32 %v2289_v41, %v780_v62  ;;  %v1034_v3 = vmul.f32 %v2282_v36, %v651_v63  ;;  %v1050_v4 = vmul.f32 %v2282_v36, %v731_v0 }
 0x168   : > { %v655_v9 = vpop.f32.mrf.mxu0  ;;  %v735_v10 = vpop.f32.mrf.mxu1 }
 0x169   : > { %v835_v11 = vmax.f32 %v803_v1, 0.0  ;;  %v851_v12 = vmax.f32 %v819_v2, 0.0  ;;  %v1073_v13 = vadd.f32 %v2296_v46, %v1034_v3  ;;  %v1089_v14 = vadd.f32 %v2296_v46, %v1050_v4 }
 0x16a   : > { %v765_v15 = vmul.f32 %v2277_v33, %v655_v9  ;;  %v781_v16 = vmul.f32 %v2277_v33, %v735_v10  ;;  %v657_v17 = vpop.f32.mrf.mxu0  ;;  %v737_v18 = vpop.f32.mrf.mxu1 }
 0x16b   : > { %v1622_v19 = vpack.c.bf16 %v835_v11, %v834_v5  ;;  %v1662_v20 = vpack.c.bf16 %v851_v12, %v850_v6  ;;  %v1702_v21 = vpack.c.bf16 %v1073_v13, %v1072_v7  ;;  %v1742_v22 = vpack.c.bf16 %v1089_v14, %v1088_v8 }
 0x16c   : > { %v804_v23 = vadd.f32 %v2289_v41, %v765_v15  ;;  %v820_v24 = vadd.f32 %v2289_v41, %v781_v16  ;;  %v1035_v25 = vmul.f32 %v2282_v36, %v657_v17  ;;  %v1051_v26 = vmul.f32 %v2282_v36, %v737_v18  ;;  %v659_v27 = vpop.f32.mrf.mxu0  ;;  %v739_v28 = vpop.f32.mrf.mxu1 }
 0x16d   : > { %1754 = vst [vmem:[%s2324_s18 + $0x30] sm:$0xff] %v1622_v19   ;;  %1762 = vst [vmem:[%s2324_s18 + $0x70] sm:$0xff] %v1662_v20   ;;  %v766_v29 = vmul.f32 %v2277_v33, %v659_v27  ;;  %v782_v30 = vmul.f32 %v2277_v33, %v739_v28 }
 0x16e   : > { %1769 = vst [vmem:[%s2317_s20 + $0x30] sm:$0xff] %v1702_v21   ;;  %1777 = vst [vmem:[%s2317_s20 + $0x70] sm:$0xff] %v1742_v22   ;;  %v661_v31 = vpop.f32.mrf.mxu0  ;;  %v741_v32 = vpop.f32.mrf.mxu1  ;;  %v836_v39 = vmax.f32 %v804_v23, 0.0  ;;  %v852_v40 = vmax.f32 %v820_v24, 0.0  ;;  %v1074_v42 = vadd.f32 %v2296_v46, %v1035_v25  ;;  %v1090_v33 = vadd.f32 %v2296_v46, %v1051_v26 }
 0x16f   : > { %v805_v34 = vadd.f32 %v2289_v41, %v766_v29  ;;  %v821_v35 = vadd.f32 %v2289_v41, %v782_v30  ;;  %v1036_v37 = vmul.f32 %v2282_v36, %v661_v31  ;;  %v1052_v38 = vmul.f32 %v2282_v36, %v741_v32 }
 0x171   : > { %v837_v43 = vmax.f32 %v805_v34, 0.0  ;;  %v853_v44 = vmax.f32 %v821_v35, 0.0  ;;  %v1075_v41 = vadd.f32 %v2296_v46, %v1036_v37  ;;  %v1091_v45 = vadd.f32 %v2296_v46, %v1052_v38 }
 0x173   : > { %v1627_v36 = vpack.c.bf16 %v837_v43, %v836_v39  ;;  %v1667_v47 = vpack.c.bf16 %v853_v44, %v852_v40  ;;  %v1707_v48 = vpack.c.bf16 %v1075_v41, %v1074_v42  ;;  %v1747_v49 = vpack.c.bf16 %v1091_v45, %v1090_v33 }
 0x175   : > { %1755 = vst [vmem:[%s2324_s18 + $0x38] sm:$0xff] %v1627_v36   ;;  %1763 = vst [vmem:[%s2324_s18 + $0x78] sm:$0xff] %v1667_v47  }
 0x176   : > { %1770 = vst [vmem:[%s2317_s20 + $0x38] sm:$0xff] %v1707_v48   ;;  %1778 = vst [vmem:[%s2317_s20 + $0x78] sm:$0xff] %v1747_v49  }
 0x177   : > { %1971 = shalt.err (!%p1968_p0)
}
 0x178   : > { %s1972_s20 = scalar_lea.hbm %s2461_s16, 2048  ;;  %s1976_s12 = scalar_lea.hbm %s2551_s6, 4096 }
 0x179   : > { %p1973_p5 = scmp.ne.s32.totalorder %s2461_s16, %s1972_s20  ;;  %p1977_p4 = scmp.lt.s32.totalorder %s2461_s16, %s2551_s6 }
 0x17a   : > { %p1978_p6 = scmp.lt.s32.totalorder %s1976_s12, %s1972_s20 }
 0x17b   : > { %p1974_p9 = pnand %p1973_p5, %p2570_p11 }
 0x17c   : > { %p1979_p8 = por %p1978_p6, %p1977_p4 }
 0x17d   : > { %p1975_p1 = pneg %p1974_p9 }
 0x17f   : > { %p1980_p3 = pnand %p1979_p8, %p1975_p1 }
 0x181   : > { %1983 = shalt.err (!%p1980_p3)
}
 0x182   : > { %s2066_s17 = smov 64   ;;  %s2067_s23 = smov 4  }
 0x183   : > { %1801 = dma.vmem_to_hbm [thread:$0]  (%p2570_p11), %s2464_s1, 2048, %s2461_s16, %s1253_s15, %s2066_s17, %s2066_s17, %s2067_s23  }
 0x184   : > { %s1258_s11 = scalar_lea.sflag [#allocation9], %s2225_s10  ;;  %s1984_s28 = scalar_lea.vmem %s2471_s30, 2048 }
 0x185   : > { %p1985_p7 = scmp.ne.s32.totalorder %s2471_s30, %s1984_s28  ;;  %s2068_s20 = smov [#allocation8]  }
 0x186   : > { %s1988_s18 = sshll.u32 %s2068_s20, 4  ;;  %s1989_s18 = int_to_ptr.vmem [resolvable:$false] %s1988_s18 }
 0x187   : > { %p1986_p12 = pnand %p1985_p7, %p2570_p11  ;;  %s1990_s29 = scalar_lea.vmem %s1989_s18, 4096 }
 0x188   : > { %p1991_p2 = scmp.lt.s32.totalorder %s2471_s30, %s1989_s18  ;;  %p1992_p13 = scmp.lt.s32.totalorder %s1990_s29, %s1984_s28 }
 0x189   : > { %p1987_p10 = pneg %p1986_p12 }
 0x18a   : > { %p1993_p0 = por %p1992_p13, %p1991_p2 }
 0x18c   : > { %p1994_p5 = pnand %p1993_p0, %p1987_p10 }
 0x18e   : > { %1997 = shalt.err (!%p1994_p5)
}
 0x18f   : > { %s1998_s1 = scalar_lea.hbm %s2469_s14, 2048  ;;  %s2002_s15 = scalar_lea.hbm %s2552_s7, 4096 }
 0x190   : > { %p1999_p9 = scmp.ne.s32.totalorder %s2469_s14, %s1998_s1  ;;  %p2003_p6 = scmp.lt.s32.totalorder %s2469_s14, %s2552_s7 }
 0x191   : > { %p2004_p8 = scmp.lt.s32.totalorder %s2002_s15, %s1998_s1 }
 0x192   : > { %p2000_p1 = pnand %p1999_p9, %p2570_p11 }
 0x193   : > { %p2005_p3 = por %p2004_p8, %p2003_p6 }
 0x194   : > { %p2001_p4 = pneg %p2000_p1 }
 0x196   : > { %p2006_p7 = pnand %p2005_p3, %p2001_p4 }
 0x198   : > { %2009 = shalt.err (!%p2006_p7)
}
 0x199   : > { %1802 = dma.vmem_to_hbm [thread:$0]  (%p2570_p11), %s2471_s30, 2048, %s2469_s14, %s1258_s11, %s2066_s17, %s2066_s17, %s2067_s23  }
 0x19a PF: > { %s1302_s19 = sand.u32 1, %s2044_s24   ;;  %p2571_p12 = scmp.ne.s32.totalorder %s2559_s8, 0 }
 0x19b   : > { %p2572_p10 = scmp.ge.s32.totalorder %s2056_s27, 2  ;;  %s1303_s28 = scalar_lea.sflag [#allocation4], %s1302_s19 }
 0x19d   : > { %p1814_p2 = pnand %p2572_p10, %p2571_p12 }
 0x19f   : > { %p1815_p13 = pneg %p1814_p2 }
 0x1a1   : > { %2035 = dma.done.wait (%p1815_p13), %s1303_s28, 2048  }
 0x1a2   : > { %2037 = vsyncadd (%p1815_p13), %s1303_s28, 4294965248  ;;  %s1312_s20 = scalar_lea.sflag [#allocation9], %s1302_s19 }
 0x1a3   : > { %2039 = dma.done.wait (%p1815_p13), %s1312_s20, 2048  }
 0x1a4   : > { %2041 = vsyncadd (%p1815_p13), %s1312_s20, 4294965248  ;;  %p25_p11 = scmp.ge.s32.totalorder %s2163_s13, 4   ;;  %s2573_s24 = smov %s2048_s25 }
 0x1a5   : > { %s2574_s25 = smov %s2052_s26  ;;  %s2575_s26 = smov %s2180_s21 }
 0x1a6   : > { %s2576_s27 = smov %s2163_s13  ;;  %27 = sbr.rel (!%p25_p11) target bundleno = 10 (0xa), region = 110 }
 0x1ab   :  { %1317 = vsyncpa [#allocation3], 1 }
 0x1ac   :  { %1319 = vsyncpa [#allocation3 + $0x1], 1 }
 0x1ad   :  { %1320 = vsyncpa [#allocation6], 1 }
 0x1ae   :  { %1321 = vsyncpa [#allocation4], 1 }
 0x1af   :  { %1323 = vsyncpa [#allocation4 + $0x1], 1 }
 0x1b0   :  { %1324 = vsyncpa [#allocation9], 1 }
 0x1b1   :  { %1326 = vsyncpa [#allocation9 + $0x1], 1 }

</bundles_post_ra>
